<compile_context>
chip_gen: v7x
topology: tpu7x:2x2x1
jax: 0.10.0
libtpu: 0.0.40
codegen_flags: <defaults>
</compile_context>

<pallas_src>
import math
import functools

import jax
import jax.numpy as jnp
from jax.experimental import pallas as pl
from jax.experimental.pallas import tpu as pltpu


def _round_up(x, m):
    return (x + m - 1) // m * m


def _divisor_tile(total, desired, quantum):
    """Largest multiple of `quantum` that is <= desired and divides `total`.

    `total` must itself be a multiple of `quantum` (so `quantum` always works).
    """
    t = max(quantum, min(desired, total))
    t = (t // quantum) * quantum
    while total % t != 0:
        t -= quantum
    return t


def _default_tb():
    """Generation-tuned batch tile (flops/byte target on the W stream)."""
    try:
        kind = jax.devices()[0].device_kind.lower()
    except Exception:
        return 512
    if "v6" in kind:               # v6e: ~918 TF/s vs ~1.4 TB/s -> big tb
        return 1024
    if "v5 lite" in kind or "v5lite" in kind or "v5e" in kind:
        return 256                 # v5e: ~240 flops/byte roofline
    return 512                     # v7x / default


def _vmem_capacity_bytes():
    try:
        return int(pltpu.get_tpu_info().vmem_capacity_bytes)
    except Exception:
        return 64 << 20            # conservative (v7x per-TC VMEM)


def _vmem_need(tb, tc, Dp, out_bytes):
    """Double-buffered VMEM footprint of all tiles (bytes)."""
    x_tile = tb * Dp * 2           # bf16 x
    w_tile = Dp * tc * 2           # bf16 W^T
    o_tile = tb * tc * out_bytes
    l_tile = tb * 128 * 4          # (tb, 1) int32 block, lane-padded to 128
    return 2 * (x_tile + w_tile + o_tile + l_tile)


def _arcmargin_kernel(xn_ref, wnt_ref, label_ref, out_ref, *,
                      s, cos_m, sin_m, th, mm, easy_margin):
    j = pl.program_id(1)  # class-tile index

    # --- cosine = x_n @ w_n ; both operands pre-normalized bf16, fp32 acc ---
    cosine = jnp.dot(xn_ref[...], wnt_ref[...],
                     preferred_element_type=jnp.float32)        # (tb, tc) f32

    tb, tc = cosine.shape

    # --- label mask: shift the label by the tile offset ((tb,1) add), not the
    #     full-tile iota ---
    local_label = label_ref[...] - j * tc                        # (tb, 1) i32
    col = jax.lax.broadcasted_iota(jnp.int32, (tb, tc), 1)
    mask = col == local_label                                    # (tb, tc)

    # --- scaled logits everywhere ---
    cs = cosine * s                                              # (tb, tc)

    # --- per-row margin fixup: phi only matters for (at most) one column per
    #     row, so extract that cosine with a masked lane-reduce and do the
    #     sine/phi/threshold math at (tb, 1) width only ---
    cos_lab = jnp.sum(jnp.where(mask, cosine, 0.0),
                      axis=-1, keepdims=True)                    # (tb, 1)
    sine = jnp.sqrt(jnp.clip(1.0 - cos_lab * cos_lab, 0.0, 1.0))
    phi = cos_lab * cos_m - sine * sin_m
    if easy_margin:
        phi = jnp.where(cos_lab > 0.0, phi, cos_lab)
    else:
        phi = jnp.where(cos_lab > th, phi, cos_lab - mm)
    delta = (phi - cos_lab) * s                                  # (tb, 1)

    out_ref[...] = (cs + jnp.where(mask, delta, 0.0)).astype(out_ref.dtype)


def arc_margin_product(x, weight, label, *, s=30.0, m=0.5, easy_margin=False,
                       tb=None, tc=1024, out_dtype=jnp.float32):
    """x: (B, D), weight: (C, D), label: (B,) int -> (B, C) logits."""
    B, D = x.shape
    C, D2 = weight.shape
    assert D == D2

    eps = 1e-12
    out_bytes = jnp.dtype(out_dtype).itemsize

    # --- hoisted normalization (once per call, not once per tile) ------------
    # x: normalize rows in fp32, stream as bf16.
    x32 = x.astype(jnp.float32)
    x_norm = jnp.sqrt(jnp.sum(x32 * x32, axis=1, keepdims=True))
    x_n = (x32 / jnp.maximum(x_norm, eps)).astype(jnp.bfloat16)          # (B, D)
    # W: normalize rows, transpose to (D, C) so the MXU consumes the tile
    # directly (lane-dense class dim), stream as bf16.
    w32 = weight.astype(jnp.float32)
    w_norm = jnp.sqrt(jnp.sum(w32 * w32, axis=1, keepdims=True))
    w_nt = (w32 / jnp.maximum(w_norm, eps)).T.astype(jnp.bfloat16)       # (D, C)

    # --- padded sizes: only to hardware alignment, not to the tile size ------
    Bp = _round_up(B, 8)
    Cp = _round_up(C, 128)          # <=127 extra classes, not round_up(C, tc)
    Dp = _round_up(D, 16)           # bf16 sublane packing; zeros are exact

    # --- tile selection (generation-aware, VMEM-budget checked) --------------
    if tb is None:
        tb = _default_tb()
    tb = _divisor_tile(Bp, tb, 8)
    tc = _divisor_tile(Cp, tc, 128)

    vmem_cap = _vmem_capacity_bytes()
    budget = max(vmem_cap - (4 << 20), 8 << 20)
    # Shrink tc first (keeps tb high -> arithmetic intensity on the W stream),
    # then tb; fail loudly if it still does not fit (no silent clamp).
    while _vmem_need(tb, tc, Dp, out_bytes) > budget and tc > 128:
        tc = _divisor_tile(Cp, tc - 128, 128)
    while _vmem_need(tb, tc, Dp, out_bytes) > budget and tb > 8:
        tb = _divisor_tile(Bp, tb - 8, 8)
    need = _vmem_need(tb, tc, Dp, out_bytes)
    if need > budget:
        raise ValueError(
            f"ArcMargin tiles do not fit VMEM: need {need} B > budget {budget} B")

    # --- padding (jnp.pad fuses with the normalize/transpose producers) ------
    # Zero padding is exact: it changes no norm and no dot product; padded
    # rows/classes are sliced off below.  Padded labels are -1 (never match).
    x_p = jnp.pad(x_n, ((0, Bp - B), (0, Dp - D)))
    w_p = jnp.pad(w_nt, ((0, Dp - D), (0, Cp - C)))
    lab_p = jnp.pad(label.astype(jnp.int32), (0, Bp - B),
                    constant_values=-1).reshape(Bp, 1)

    grid = (Bp // tb, Cp // tc)
    vmem_limit = int(min(vmem_cap, max(need + (4 << 20), 32 << 20)))

    kernel = functools.partial(
        _arcmargin_kernel,
        s=float(s), cos_m=math.cos(m), sin_m=math.sin(m),
        th=math.cos(math.pi - m), mm=math.sin(math.pi - m) * m,
        easy_margin=easy_margin,
    )

    out = pl.pallas_call(
        kernel,
        out_shape=jax.ShapeDtypeStruct((Bp, Cp), out_dtype),
        grid=grid,
        in_specs=[
            pl.BlockSpec((tb, Dp), lambda i, j: (i, 0)),   # x tile (resident over j)
            pl.BlockSpec((Dp, tc), lambda i, j: (0, j)),   # streamed W^T tile
            pl.BlockSpec((tb, 1), lambda i, j: (i, 0)),    # labels for this B tile
        ],
        out_specs=pl.BlockSpec((tb, tc), lambda i, j: (i, j)),
        compiler_params=pltpu.CompilerParams(
            dimension_semantics=("parallel", "parallel"),
            vmem_limit_bytes=vmem_limit,
        ),
    )(x_p, w_p, lab_p)

    return out[:B, :C]


def _reference(x, weight, label, *, s=30.0, m=0.5, easy_margin=False,
               round_bf16=False):
    """Pure-JAX reference matching the PyTorch module (fp32 path).
    round_bf16=True mimics the kernel's bf16 MXU operands (fp32 accumulation)."""
    eps = 1e-12
    xn = x / jnp.maximum(jnp.linalg.norm(x, axis=1, keepdims=True), eps)
    wn = weight / jnp.maximum(jnp.linalg.norm(weight, axis=1, keepdims=True), eps)
    if round_bf16:
        xn = xn.astype(jnp.bfloat16).astype(jnp.float32)
        wn = wn.astype(jnp.bfloat16).astype(jnp.float32)
    cosine = jnp.dot(xn, wn.T, precision=jax.lax.Precision.HIGHEST)
    sine = jnp.sqrt(jnp.clip(1.0 - cosine ** 2, 0.0, 1.0))
    phi = cosine * math.cos(m) - sine * math.sin(m)
    if easy_margin:
        phi = jnp.where(cosine > 0, phi, cosine)
    else:
        phi = jnp.where(cosine > math.cos(math.pi - m),
                        phi, cosine - math.sin(math.pi - m) * m)
    one_hot = jax.nn.one_hot(label, weight.shape[0], dtype=cosine.dtype)
    return (one_hot * phi + (1.0 - one_hot) * cosine) * s


if __name__ == "__main__":
    # Small shapes consistent with the module: batch=8, in_features=32, classes=16
    B, D, C = 8, 32, 16
    key = jax.random.PRNGKey(0)
    kx, kw, kl = jax.random.split(key, 3)

    x = jax.random.normal(kx, (B, D), dtype=jnp.float32)

    # Xavier-uniform init for weight (out_features, in_features), deterministic
    bound = math.sqrt(6.0 / (D + C))
    weight = jax.random.uniform(kw, (C, D), dtype=jnp.float32,
                                minval=-bound, maxval=bound)

    label = jax.random.randint(kl, (B,), 0, C, dtype=jnp.int32)

    out = arc_margin_product(x, weight, label, s=30.0, m=0.5, easy_margin=False)
    out = jax.block_until_ready(out)
    assert out.shape == (B, C)
    assert out.dtype == jnp.float32

    # Strict check vs a reference that applies the same bf16 rounding to the
    # matmul operands (kernel accumulates in fp32 on the MXU).
    ref_bf16 = _reference(x, weight, label, s=30.0, m=0.5,
                          easy_margin=False, round_bf16=True)
    assert jnp.allclose(out, ref_bf16, atol=3e-3, rtol=3e-3), \
        "mismatch vs bf16-rounded reference"

    # Looser sanity check vs the exact fp32 reference (bf16 operand rounding).
    ref_f32 = _reference(x, weight, label, s=30.0, m=0.5, easy_margin=False)
    assert jnp.allclose(out, ref_f32, atol=0.25, rtol=0.05), \
        "mismatch vs fp32 reference"

    # Also exercise the easy_margin branch once.
    out_em = arc_margin_product(x, weight, label, s=30.0, m=0.5, easy_margin=True)
    out_em = jax.block_until_ready(out_em)
    ref_em = _reference(x, weight, label, s=30.0, m=0.5,
                        easy_margin=True, round_bf16=True)
    assert jnp.allclose(out_em, ref_em, atol=3e-3, rtol=3e-3), \
        "mismatch vs bf16-rounded reference (easy_margin)"

    print("KERNEL_OK")
</pallas_src>

<mosaic_0001>
module attributes {stable_mosaic.version = 11 : i64} {
  func.func @_arcmargin_kernel(%arg0: i32, %arg1: i32, %arg2: memref<8x32xbf16, #tpu.memory_space<vmem>>, %arg3: memref<32x128xbf16, #tpu.memory_space<vmem>>, %arg4: memref<8x1xi32, #tpu.memory_space<vmem>>, %arg5: memref<8x128xf32, #tpu.memory_space<vmem>>) attributes {dimension_semantics = [#tpu.dimension_semantics<parallel>, #tpu.dimension_semantics<parallel>], iteration_bounds = array<i64: 1, 1>, scalar_prefetch = 0 : i64, scratch_operands = 0 : i64, tpu.core_type = #tpu.core_type<tc>, window_params = [{transform_indices = @transform_0, window_bounds = array<i64: 8, 32>}, {transform_indices = @transform_1, window_bounds = array<i64: 32, 128>}, {transform_indices = @transform_2, window_bounds = array<i64: 8, 1>}, {transform_indices = @transform_3, window_bounds = array<i64: 8, 128>}]} {
    %c0 = arith.constant 0 : index
    %c0_0 = arith.constant 0 : index
    %0 = vector.load %arg2[%c0, %c0_0] : memref<8x32xbf16, #tpu.memory_space<vmem>>, vector<8x32xbf16>
    %c0_1 = arith.constant 0 : index
    %c0_2 = arith.constant 0 : index
    %1 = vector.load %arg3[%c0_1, %c0_2] : memref<32x128xbf16, #tpu.memory_space<vmem>>, vector<32x128xbf16>
    %cst = arith.constant dense<0.000000e+00> : vector<8x128xf32>
    %2 = tpu.matmul %0, %1, %cst {dimension_numbers = #tpu.dot_dimension_numbers<[1], [0], [0], [1], [0, 0, 1, 1], [], []>} : vector<8x32xbf16>, vector<32x128xbf16>, vector<8x128xf32> -> vector<8x128xf32>
    %c0_3 = arith.constant 0 : index
    %c0_4 = arith.constant 0 : index
    %3 = vector.load %arg4[%c0_3, %c0_4] : memref<8x1xi32, #tpu.memory_space<vmem>>, vector<8x1xi32>
    %c128_i32 = arith.constant 128 : i32
    %4 = arith.muli %arg1, %c128_i32 : i32
    %5 = vector.broadcast %4 : i32 to vector<8x1xi32>
    %6 = arith.subi %3, %5 : vector<8x1xi32>
    %7 = tpu.iota {dimensions = array<i32: 1>} : vector<8x128xi32>
    %8 = vector.broadcast %6 : vector<8x1xi32> to vector<8x128xi32>
    %9 = arith.cmpi eq, %7, %8 : vector<8x128xi32>
    %cst_5 = arith.constant 3.000000e+01 : f32
    %10 = vector.broadcast %cst_5 : f32 to vector<8x128xf32>
    %11 = arith.mulf %2, %10 : vector<8x128xf32>
    %cst_6 = arith.constant 0.000000e+00 : f32
    %12 = vector.broadcast %cst_6 : f32 to vector<8x128xf32>
    %13 = arith.select %9, %2, %12 : vector<8x128xi1>, vector<8x128xf32>
    %cst_7 = arith.constant dense<0.000000e+00> : vector<8xf32>
    %14 = vector.multi_reduction <add>, %13, %cst_7 [1] : vector<8x128xf32> to vector<8xf32>
    %15 = vector.shape_cast %14 : vector<8xf32> to vector<8x1xf32>
    %16 = arith.mulf %15, %15 : vector<8x1xf32>
    %cst_8 = arith.constant 1.000000e+00 : f32
    %17 = vector.broadcast %cst_8 : f32 to vector<8x1xf32>
    %18 = arith.subf %17, %16 : vector<8x1xf32>
    %cst_9 = arith.constant 0.000000e+00 : f32
    %cst_10 = arith.constant 1.000000e+00 : f32
    %19 = vector.broadcast %cst_9 : f32 to vector<8x1xf32>
    %20 = arith.maximumf %19, %18 : vector<8x1xf32>
    %21 = vector.broadcast %cst_10 : f32 to vector<8x1xf32>
    %22 = arith.minimumf %21, %20 : vector<8x1xf32>
    %23 = math.sqrt %22 : vector<8x1xf32>
    %cst_11 = arith.constant 0.87758255 : f32
    %24 = vector.broadcast %cst_11 : f32 to vector<8x1xf32>
    %25 = arith.mulf %15, %24 : vector<8x1xf32>
    %cst_12 = arith.constant 0.47942555 : f32
    %26 = vector.broadcast %cst_12 : f32 to vector<8x1xf32>
    %27 = arith.mulf %23, %26 : vector<8x1xf32>
    %28 = arith.subf %25, %27 : vector<8x1xf32>
    %cst_13 = arith.constant -0.87758255 : f32
    %29 = vector.broadcast %cst_13 : f32 to vector<8x1xf32>
    %30 = arith.cmpf ogt, %15, %29 : vector<8x1xf32>
    %cst_14 = arith.constant 0.239712775 : f32
    %31 = vector.broadcast %cst_14 : f32 to vector<8x1xf32>
    %32 = arith.subf %15, %31 : vector<8x1xf32>
    %33 = arith.select %30, %28, %32 : vector<8x1xi1>, vector<8x1xf32>
    %34 = arith.subf %33, %15 : vector<8x1xf32>
    %cst_15 = arith.constant 3.000000e+01 : f32
    %35 = vector.broadcast %cst_15 : f32 to vector<8x1xf32>
    %36 = arith.mulf %34, %35 : vector<8x1xf32>
    %cst_16 = arith.constant 0.000000e+00 : f32
    %37 = vector.shape_cast %36 : vector<8x1xf32> to vector<8x1xf32>
    %38 = vector.broadcast %37 : vector<8x1xf32> to vector<8x128xf32>
    %39 = vector.broadcast %cst_16 : f32 to vector<8x128xf32>
    %40 = arith.select %9, %38, %39 : vector<8x128xi1>, vector<8x128xf32>
    %41 = arith.addf %11, %40 : vector<8x128xf32>
    %c0_17 = arith.constant 0 : index
    %c0_18 = arith.constant 0 : index
    %42 = vector.load %arg5[%c0_17, %c0_18] : memref<8x128xf32, #tpu.memory_space<vmem>>, vector<8x128xf32>
    tpu.vector_store %arg5[%c0_17, %c0_18], %41 {strides = array<i32>} : memref<8x128xf32, #tpu.memory_space<vmem>>, vector<8x128xf32>,
    return
  }
  func.func @transform_0(%arg0: i32, %arg1: i32) -> (i32, i32) {
    %c0_i32 = arith.constant 0 : i32
    %c0_i32_0 = arith.constant 0 : i32
    return %arg0, %c0_i32 : i32, i32
  }
  func.func @transform_1(%arg0: i32, %arg1: i32) -> (i32, i32) {
    %c0_i32 = arith.constant 0 : i32
    %c0_i32_0 = arith.constant 0 : i32
    return %c0_i32, %arg1 : i32, i32
  }
  func.func @transform_2(%arg0: i32, %arg1: i32) -> (i32, i32) {
    %c0_i32 = arith.constant 0 : i32
    %c0_i32_0 = arith.constant 0 : i32
    return %arg0, %c0_i32 : i32, i32
  }
  func.func @transform_3(%arg0: i32, %arg1: i32) -> (i32, i32) {
    %c0_i32 = arith.constant 0 : i32
    return %arg0, %arg1 : i32, i32
  }
}

</mosaic_0001>

<bundles_post_ra>
// kernel: tpu_custom_call.1
= control target key start
LH: loop header
LB: loop body
LE: loop exit
PB: predicated region body
PF: predicated region fallthrough
CT: control target
= control target key end

     0   :  { %8 = vsyncpa [#allocation3], 0  ;;  %s276_s0 = inlined_call_operand.vmem [shape: bf16[8,32], index: 0, kind: input, shape index: {}]   ;;  %s277_s1 = inlined_call_operand.hbm [shape: bf16[32,128], index: 1, kind: input, shape index: {}]   ;;  %s278_s2 = inlined_call_operand.vmem [shape: s32[8,1], index: 2, kind: input, shape index: {}]   ;;  %s279_s3 = inlined_call_operand.hbm [shape: f32[8,128], index: 3, kind: output, shape index: {}]  }
   0x1   :  { %9 = vsyncpa [#allocation4], 0  ;;  %s217_s12 = smov [#allocation2]   ;;  %s169_s16 = scalar_lea.hbm %s277_s1, 256 }
   0x2   :  { %s17_s13 = sshll.u32 %s217_s12, 4  ;;  %p170_p0 = scmp.ne.s32.totalorder %s277_s1, %s169_s16  ;;  %s18_s13 = int_to_ptr.vmem [resolvable:$true] %s17_s13 }
   0x3   :  { %p173_p1 = scmp.lt.u32.totalorder %s169_s16, %s277_s1 }
   0x5   :  { %p175_p2 = pnand %p173_p1, %p170_p0 }
   0x7   :  { %178 = shalt.err (!%p175_p2)
}
   0x8   :  { %s179_s21 = scalar_lea.vmem %s18_s13, 256  ;;  %p184_p4 = scmp.lt.s32.totalorder %s18_s13, %s18_s13 }
   0x9   :  { %p180_p3 = scmp.ne.s32.totalorder %s18_s13, %s179_s21  ;;  %p185_p5 = scmp.lt.s32.totalorder %s179_s21, %s179_s21 }
   0xb   :  { %p186_p6 = por %p185_p5, %p184_p4 }
   0xd   :  { %p187_p7 = pnand %p186_p6, %p180_p3 }
   0xf   :  { %190 = shalt.err (!%p187_p7)
}
  0x10   :  { %s218_s22 = smov 64   ;;  %s219_s23 = smov 4  }
  0x11   :  { %23 = dma.hbm_to_vmem [thread:$0]  %s277_s1, 256, %s18_s13, [#allocation3], %s218_s22, %s218_s22, %s219_s23  }
  0x12   :  { %213 = dma.done.wait [#allocation3], 256  }
  0x13   :  { %214 = vsyncadd [#allocation3], 4294967040  ;;  %v220_v0 = vmov 0.0   ;;  %vm221_vm0 = vmmov 0   ;;  %v222_v1 = vmov 0   ;;  %v165_v2 = vld [vmem:[#allocation2] sm:$0xff]   ;;  %v95_v6 = vlaneseq }
  0x14   :  { %149 = vmatprep.subr.bf16.mxu0 %v220_v0  ;;  %153 = vmatprep.mubr.msk.bf16.mxu0 %vm221_vm0, %v220_v0  ;;  %v166_v3 = vld [vmem:[#allocation2 + $0x8] sm:$0xff]   ;;  %v91_v4 = vld [vmem:[%s278_s2] sm:$0xff]  ;;  %vm47_vm1 = vcmask 261120  }
  0x15   :  { %164 = vset.pattern.permute.xlu0 %v222_v1  ;;  %150 = vmatpush3.bf16.msra.mxu0 %v165_v2  ;;  %v30_v5 = vld [vmem:[%s276_s0] sm:$0xf]  ;;  %v96_v7 = vand.u32 127, %v95_v6  ;;  %s223_s0 = smov [#allocation5]  }
  0x16   :  { %151 = vmatprep.subr.bf16.mxu0 %v220_v0  ;;  %98 = vperm.xlu0 %164, %v91_v4   ;;  %s133_s2 = sshll.u32 %s223_s0, 4  ;;  %s134_s2 = int_to_ptr.vmem [resolvable:$true] %s133_s2 }
  0x17   :  { %s191_s29 = scalar_lea.vmem %s134_s2, 128  ;;  %p196_p9 = scmp.lt.s32.totalorder %s134_s2, %s134_s2 }
  0x18   :  { %p192_p8 = scmp.ne.s32.totalorder %s134_s2, %s191_s29  ;;  %p197_p10 = scmp.lt.s32.totalorder %s191_s29, %s191_s29 }
  0x19   :  { %152 = vmatpush3.bf16.msra.mxu0 %v166_v3 }
  0x1a   :  { %p198_p11 = por %p197_p10, %p196_p9 }
  0x1c   :  { %154 = vmatmul.mubr.msk.bf16.vlgmr.msra.gmra.mrb[0].mxu0 %vm47_vm1, %v30_v5  ;;  %p199_p12 = pnand %p198_p11, %p192_p8 }
  0x95   :  { %v99_v8 = vpop.permute.xlu0 %98 }
  0x96   :  { %vm100_vm2 = vcmp.eq.s32.totalorder %v96_v7, %v99_v8 }
  0xef   :  { %v85_v9 = vpop.f32.mrb[0].mxu0 }
  0xf0   :  { %v155_v10 = vpop.f32.mrb[1].mxu0  ;;  %v102_v11 = vsel %vm100_vm2, %v85_v9, 0.0  ;;  %v101_v31 = vmul.f32 30.0, %v85_v9 }
  0xf1   :  { %103 = vadd.xlane.f32.xlu0 %v102_v11  ;;  %v88_v12 = vpop.f32.mrb[2].mxu0 }
  0xf2   :  { %v156_v13 = vpop.f32.mrb[3].mxu0 }
 0x17e   :  { %v104_v14 = vpop.xlane.xlu0 %103 }
 0x17f   :  { %v105_v15 = vmul.f32 %v104_v14, %v104_v14  ;;  %v116_v24 = vmul.f32 0.87758255, %v104_v14  ;;  %v145_v27 = vadd.f32 -0.23971277, %v104_v14  ;;  %vm119_vm5 = vcmp.gt.f32.partialorder %v104_v14, -0.87758255 }
 0x181   :  { %v106_v16 = vsub.f32 1.0, %v105_v15 }
 0x183   :  { %v107_v17 = vmax.f32 %v106_v16, 0.0 }
 0x185   :  { %v108_v18 = vmin.f32 %v107_v17, 1.0 }
 0x187   :  { %167 = vrsqrt.f32 %v108_v18  ;;  %vm111_vm3 = vcmp.eq.f32.partialorder %v108_v18, inf  ;;  %v114_v21 = vand.u32 2147483648, %v108_v18  ;;  %vm113_vm4 = vcmp.eq.f32.partialorder %v108_v18, 0.0 }
 0x191   :  { %v168_v19 = vpop.eup %167 }
 0x192   :  { %v110_v20 = vmul.f32 %v168_v19, %v108_v18 }
 0x194   :  { %v112_v22 = vsel %vm111_vm3, %v108_v18, %v110_v20 }
 0x195   :  { %v115_v23 = vsel %vm113_vm4, %v114_v21, %v112_v22 }
 0x196   :  { %v117_v25 = vmul.f32 0.47942555, %v115_v23 }
 0x198   :  { %v118_v26 = vsub.f32 %v116_v24, %v117_v25 }
 0x19a   :  { %v121_v28 = vsel %vm119_vm5, %v118_v26, %v145_v27 }
 0x19b   :  { %v122_v29 = vsub.f32 %v121_v28, %v104_v14 }
 0x19d   :  { %v123_v30 = vmul.f32 30.0, %v122_v29 }
 0x19f   :  { %v124_v32 = vsel %vm100_vm2, %v123_v30, 0.0 }
 0x1a0   :  { %v125_v33 = vadd.f32 %v124_v32, %v101_v31 }
 0x1a2   :  { %126 = vst [vmem:[#allocation5] sm:$0xff] %v125_v33 }
 0x1a3   :  { %202 = shalt.err (!%p199_p12)
}
 0x1a4   :  { %s203_s5 = scalar_lea.hbm %s279_s3, 128 }
 0x1a5   :  { %p204_p13 = scmp.ne.s32.totalorder %s279_s3, %s203_s5  ;;  %p207_p0 = scmp.lt.u32.totalorder %s203_s5, %s279_s3 }
 0x1a7   :  { %p209_p1 = pnand %p207_p0, %p204_p13 }
 0x1a9   :  { %212 = shalt.err (!%p209_p1)
}
 0x1aa   :  { %136 = dma.vmem_to_hbm [thread:$0]  %s134_s2, 128, %s279_s3, [#allocation4]  }
 0x1ab   :  { %215 = dma.done.wait [#allocation4], 128  }
 0x1ac   :  { %216 = vsyncadd [#allocation4], 4294967168 }
 0x1ad   :  { %140 = vsyncpa [#allocation3], 1 }
 0x1ae   :  { %141 = vsyncpa [#allocation4], 1 }

</bundles_post_ra>
